<compile_context>
chip_gen: v7x
topology: tpu7x:2x2x1
jax: 0.10.0
libtpu: 0.0.40
codegen_flags: <defaults>
</compile_context>

<pallas_src>
import jax
import jax.numpy as jnp
from jax.experimental import pallas as pl
from jax.experimental.pallas import tpu as pltpu

_LANE = 128
_SUBLANE = 16  # bf16-clean sublane multiple (also satisfies f32's 8)


def _round_up(v, m):
    return ((v + m - 1) // m) * m


def _cdiv(a, b):
    return -(-a // b)


def _geo_embedder_kernel(
    x_ref,                       # f32 [TILE_B, D]           (unpadded feature dim)
    w1_ref, b1_ref,              # encoder   D      -> H      (bf16 / f32)
    w2_ref, b2_ref,              # encoder   H      -> E
    w35_ref, b35_ref,            # fused     E      -> H||PH  (decoder+predictor hidden)
    w46_ref, b46_ref,            # fused     H||PH  -> 0||rec||pred (lane-shifted by E)
    out_ref,                     # f32 [TILE_B, out_pad]  packed emb|rec|pred
):
    x = x_ref[...].astype(jnp.bfloat16)          # in-kernel cast (VPU, free)

    # ---- encoder ----
    h1 = jnp.dot(x, w1_ref[...], preferred_element_type=jnp.float32) + b1_ref[...]
    h1 = jnp.maximum(h1, 0.0).astype(jnp.bfloat16)                       # ReLU
    emb = jnp.tanh(
        jnp.dot(h1, w2_ref[...], preferred_element_type=jnp.float32) + b2_ref[...]
    )                                                                    # Tanh, f32

    # ---- decoder + predictor hidden layers (fused: h2 || h3) ----
    emb_c = emb.astype(jnp.bfloat16)
    h23 = jnp.dot(emb_c, w35_ref[...], preferred_element_type=jnp.float32) + b35_ref[...]
    h23 = jnp.maximum(h23, 0.0).astype(jnp.bfloat16)                     # ReLU

    # ---- fused output layer: rec || pred, already shifted into lanes [E, E+D+1) ----
    rest = jnp.dot(h23, w46_ref[...], preferred_element_type=jnp.float32) + b46_ref[...]

    # emb occupies lanes [0, E) (its padded lanes are exactly 0 by construction);
    # rest is 0 in lanes [0, E).  One add packs them; one store writes them.
    emb_wide = emb
    pad = out_ref.shape[-1] - emb.shape[-1]
    if pad > 0:                                   # static; no-op for default dims
        emb_wide = jnp.pad(emb, ((0, 0), (0, pad)))
    out_ref[...] = (emb_wide + rest).astype(out_ref.dtype)


def _build_fused_weights(params, D, H, E, PH, h_pad, e_pad, hp_pad, out_pad):
    bf16, f32 = jnp.bfloat16, jnp.float32

    w1p = jnp.zeros((D, h_pad), bf16).at[:, :H].set(params["w1"].astype(bf16))
    b1p = jnp.zeros((1, h_pad), f32).at[:, :H].set(params["b1"].astype(f32))

    w2p = jnp.zeros((h_pad, e_pad), bf16).at[:H, :E].set(params["w2"].astype(bf16))
    b2p = jnp.zeros((1, e_pad), f32).at[:, :E].set(params["b2"].astype(f32))

    # w35 = [w3 | w5]  : emb -> (h2 || h3)
    w35p = (jnp.zeros((e_pad, hp_pad), bf16)
            .at[:E, :H].set(params["w3"].astype(bf16))
            .at[:E, H:H + PH].set(params["w5"].astype(bf16)))
    b35p = (jnp.zeros((1, hp_pad), f32)
            .at[:, :H].set(params["b3"].astype(f32))
            .at[:, H:H + PH].set(params["b5"].astype(f32)))

    # w46 block matrix: rows [0,H) -> rec columns [E, E+D); rows [H, H+PH) -> pred col E+D
    w46p = (jnp.zeros((hp_pad, out_pad), bf16)
            .at[:H, E:E + D].set(params["w4"].astype(bf16))
            .at[H:H + PH, E + D:E + D + 1].set(params["w6"].astype(bf16)))
    b46p = (jnp.zeros((1, out_pad), f32)
            .at[:, E:E + D].set(params["b4"].astype(f32))
            .at[:, E + D:E + D + 1].set(params["b6"].astype(f32)))

    return w1p, b1p, w2p, b2p, w35p, b35p, w46p, b46p


def predictive_geo_embedder_forward(x, params, *, tile_b=512):
    """x: [B, n_time_steps] float32.  params: dict of [in,out] weights, [1,out] biases.

    Returns (embedding [B, emb_dim], reconstruction [B, n_time_steps],
             prediction [B, 1]), all float32.
    """
    B, D = x.shape
    H = params["w1"].shape[1]          # hidden_dim
    E = params["w2"].shape[1]          # emb_dim
    PH = params["w5"].shape[1]         # hidden_dim // 2

    h_pad = _round_up(H, _LANE)
    e_pad = _round_up(E, _LANE)
    hp_pad = _round_up(H + PH, _LANE)
    out_pad = _round_up(E + D + 1, _LANE)   # packed emb|rec|pred slab width

    # ---- batch tiling: multiple of 16, minimal pad waste, >=2 tiles when possible ----
    b16 = _round_up(B, _SUBLANE)
    tile_b = _round_up(max(int(tile_b), _SUBLANE), _SUBLANE)
    num_tiles = max(1, _cdiv(b16, tile_b))
    if num_tiles == 1 and b16 > _SUBLANE:
        num_tiles = 2                          # let both v7x TensorCores work
    tile_b = _round_up(_cdiv(b16, num_tiles), _SUBLANE)
    b_pad = tile_b * num_tiles

    xb = x.astype(jnp.float32)
    if b_pad != B:                             # pad batch dim only (feature dim raw)
        xb = jnp.pad(xb, ((0, b_pad - B), (0, 0)))

    w1p, b1p, w2p, b2p, w35p, b35p, w46p, b46p = _build_fused_weights(
        params, D, H, E, PH, h_pad, e_pad, hp_pad, out_pad)

    resident = pl.BlockSpec(memory_space=pltpu.MemorySpace.VMEM)

    # Cost estimate from REAL (unpadded) dims — advisory for XLA scheduling.
    param_bytes = sum(int(v.size) * 4 for v in params.values())
    flops = 2 * B * (D * H + H * E + E * (H + PH) + (H + PH) * (D + 1))
    bytes_accessed = B * D * 4 + param_bytes + B * (E + D + 1) * 4

    out = pl.pallas_call(
        _geo_embedder_kernel,
        grid=(num_tiles,),
        out_shape=jax.ShapeDtypeStruct((b_pad, out_pad), jnp.float32),
        in_specs=[
            pl.BlockSpec((tile_b, D), lambda i: (i, 0)),   # x tile (full last dim)
            resident, resident,                            # w1, b1
            resident, resident,                            # w2, b2
            resident, resident,                            # w35, b35
            resident, resident,                            # w46, b46
        ],
        out_specs=pl.BlockSpec((tile_b, out_pad), lambda i: (i, 0)),
        compiler_params=pltpu.CompilerParams(
            dimension_semantics=("parallel",),
        ),
        cost_estimate=pl.CostEstimate(
            flops=flops,
            transcendentals=B * E,
            bytes_accessed=bytes_accessed,
        ),
    )(xb, w1p, b1p, w2p, b2p, w35p, b35p, w46p, b46p)

    # Unpack the slab, strip batch padding.
    emb = out[:B, :E]
    rec = out[:B, E:E + D]
    pred = out[:B, E + D:E + D + 1]
    return emb, rec, pred


def init_params(key, n_time_steps, emb_dim=8, hidden_dim=32):
    """Deterministic init, shapes matching the nn.Linear layers ([in, out] storage)."""
    ks = jax.random.split(key, 12)

    def lin(kw, kb, fan_in, fan_out):
        bound = 1.0 / jnp.sqrt(jnp.float32(fan_in))
        w = jax.random.uniform(kw, (fan_in, fan_out), jnp.float32, -bound, bound)
        b = jax.random.uniform(kb, (1, fan_out), jnp.float32, -bound, bound)
        return w, b

    w1, b1 = lin(ks[0], ks[1], n_time_steps, hidden_dim)
    w2, b2 = lin(ks[2], ks[3], hidden_dim, emb_dim)
    w3, b3 = lin(ks[4], ks[5], emb_dim, hidden_dim)
    w4, b4 = lin(ks[6], ks[7], hidden_dim, n_time_steps)
    w5, b5 = lin(ks[8], ks[9], emb_dim, hidden_dim // 2)
    w6, b6 = lin(ks[10], ks[11], hidden_dim // 2, 1)
    return {"w1": w1, "b1": b1, "w2": w2, "b2": b2, "w3": w3, "b3": b3,
            "w4": w4, "b4": b4, "w5": w5, "b5": b5, "w6": w6, "b6": b6}


def reference_forward(x, p):
    """Pure-JAX f32 reference matching the PyTorch forward."""
    h1 = jnp.maximum(x @ p["w1"] + p["b1"], 0.0)
    emb = jnp.tanh(h1 @ p["w2"] + p["b2"])
    h2 = jnp.maximum(emb @ p["w3"] + p["b3"], 0.0)
    rec = h2 @ p["w4"] + p["b4"]
    h3 = jnp.maximum(emb @ p["w5"] + p["b5"], 0.0)
    pred = h3 @ p["w6"] + p["b6"]
    return emb, rec, pred


if __name__ == "__main__":
    key = jax.random.PRNGKey(0)
    k_x, k_p = jax.random.split(key)

    # Small shapes consistent with the module defaults (emb_dim=8, hidden_dim=32);
    # B and n_time_steps off the 16/128 grid to exercise padding + 2-tile split.
    B, n_time_steps, emb_dim, hidden_dim = 37, 24, 8, 32
    x = jax.random.normal(k_x, (B, n_time_steps), jnp.float32)
    params = init_params(k_p, n_time_steps, emb_dim, hidden_dim)

    emb, rec, pred = predictive_geo_embedder_forward(x, params)
    jax.block_until_ready((emb, rec, pred))

    emb_ref, rec_ref, pred_ref = reference_forward(x, params)
    assert emb.shape == (B, emb_dim)
    assert rec.shape == (B, n_time_steps)
    assert pred.shape == (B, 1)
    # bf16 inputs/weights with f32 accumulation -> loose tolerance vs f32 reference.
    assert jnp.allclose(emb, emb_ref, atol=5e-2, rtol=5e-2)
    assert jnp.allclose(rec, rec_ref, atol=5e-2, rtol=5e-2)
    assert jnp.allclose(pred, pred_ref, atol=5e-2, rtol=5e-2)

    print("KERNEL_OK")
</pallas_src>

<mosaic_0001>
module attributes {stable_mosaic.version = 11 : i64} {
  func.func @_geo_embedder_kernel(%arg0: i32, %arg1: memref<32x24xf32, #tpu.memory_space<vmem>>, %arg2: memref<24x128xbf16, #tpu.memory_space<vmem>>, %arg3: memref<1x128xf32, #tpu.memory_space<vmem>>, %arg4: memref<128x128xbf16, #tpu.memory_space<vmem>>, %arg5: memref<1x128xf32, #tpu.memory_space<vmem>>, %arg6: memref<128x128xbf16, #tpu.memory_space<vmem>>, %arg7: memref<1x128xf32, #tpu.memory_space<vmem>>, %arg8: memref<128x128xbf16, #tpu.memory_space<vmem>>, %arg9: memref<1x128xf32, #tpu.memory_space<vmem>>, %arg10: memref<32x128xf32, #tpu.memory_space<vmem>>) attributes {dimension_semantics = [#tpu.dimension_semantics<parallel>], iteration_bounds = array<i64: 2>, scalar_prefetch = 0 : i64, scratch_operands = 0 : i64, tpu.core_type = #tpu.core_type<tc>, window_params = [{transform_indices = @transform_0, window_bounds = array<i64: 32, 24>}, {pipeline_mode = #tpu.pipeline_mode<synchronous>, transform_indices = @transform_1, window_bounds = array<i64: 24, 128>}, {pipeline_mode = #tpu.pipeline_mode<synchronous>, transform_indices = @transform_2, window_bounds = array<i64: 1, 128>}, {pipeline_mode = #tpu.pipeline_mode<synchronous>, transform_indices = @transform_3, window_bounds = array<i64: 128, 128>}, {pipeline_mode = #tpu.pipeline_mode<synchronous>, transform_indices = @transform_4, window_bounds = array<i64: 1, 128>}, {pipeline_mode = #tpu.pipeline_mode<synchronous>, transform_indices = @transform_5, window_bounds = array<i64: 128, 128>}, {pipeline_mode = #tpu.pipeline_mode<synchronous>, transform_indices = @transform_6, window_bounds = array<i64: 1, 128>}, {pipeline_mode = #tpu.pipeline_mode<synchronous>, transform_indices = @transform_7, window_bounds = array<i64: 128, 128>}, {pipeline_mode = #tpu.pipeline_mode<synchronous>, transform_indices = @transform_8, window_bounds = array<i64: 1, 128>}, {transform_indices = @transform_9, window_bounds = array<i64: 32, 128>}]} {
    %c0 = arith.constant 0 : index
    %c0_0 = arith.constant 0 : index
    %0 = vector.load %arg1[%c0, %c0_0] : memref<32x24xf32, #tpu.memory_space<vmem>>, vector<32x24xf32>
    %1 = arith.truncf %0 : vector<32x24xf32> to vector<32x24xbf16>
    %c0_1 = arith.constant 0 : index
    %c0_2 = arith.constant 0 : index
    %2 = vector.load %arg2[%c0_1, %c0_2] : memref<24x128xbf16, #tpu.memory_space<vmem>>, vector<24x128xbf16>
    %cst = arith.constant dense<0.000000e+00> : vector<32x128xf32>
    %3 = tpu.matmul %1, %2, %cst {dimension_numbers = #tpu.dot_dimension_numbers<[1], [0], [0], [1], [0, 0, 1, 1], [], []>} : vector<32x24xbf16>, vector<24x128xbf16>, vector<32x128xf32> -> vector<32x128xf32>
    %c0_3 = arith.constant 0 : index
    %c0_4 = arith.constant 0 : index
    %4 = vector.load %arg3[%c0_3, %c0_4] : memref<1x128xf32, #tpu.memory_space<vmem>>, vector<1x128xf32>
    %5 = vector.broadcast %4 : vector<1x128xf32> to vector<32x128xf32>
    %6 = arith.addf %3, %5 : vector<32x128xf32>
    %cst_5 = arith.constant 0.000000e+00 : f32
    %7 = vector.broadcast %cst_5 : f32 to vector<32x128xf32>
    %8 = arith.maximumf %6, %7 : vector<32x128xf32>
    %9 = arith.truncf %8 : vector<32x128xf32> to vector<32x128xbf16>
    %c0_6 = arith.constant 0 : index
    %c0_7 = arith.constant 0 : index
    %10 = vector.load %arg4[%c0_6, %c0_7] : memref<128x128xbf16, #tpu.memory_space<vmem>>, vector<128x128xbf16>
    %cst_8 = arith.constant dense<0.000000e+00> : vector<32x128xf32>
    %11 = tpu.matmul %9, %10, %cst_8 {dimension_numbers = #tpu.dot_dimension_numbers<[1], [0], [0], [1], [0, 0, 1, 1], [], []>} : vector<32x128xbf16>, vector<128x128xbf16>, vector<32x128xf32> -> vector<32x128xf32>
    %c0_9 = arith.constant 0 : index
    %c0_10 = arith.constant 0 : index
    %12 = vector.load %arg5[%c0_9, %c0_10] : memref<1x128xf32, #tpu.memory_space<vmem>>, vector<1x128xf32>
    %13 = vector.broadcast %12 : vector<1x128xf32> to vector<32x128xf32>
    %14 = arith.addf %11, %13 : vector<32x128xf32>
    %15 = math.tanh %14 : vector<32x128xf32>
    %16 = arith.truncf %15 : vector<32x128xf32> to vector<32x128xbf16>
    %c0_11 = arith.constant 0 : index
    %c0_12 = arith.constant 0 : index
    %17 = vector.load %arg6[%c0_11, %c0_12] : memref<128x128xbf16, #tpu.memory_space<vmem>>, vector<128x128xbf16>
    %cst_13 = arith.constant dense<0.000000e+00> : vector<32x128xf32>
    %18 = tpu.matmul %16, %17, %cst_13 {dimension_numbers = #tpu.dot_dimension_numbers<[1], [0], [0], [1], [0, 0, 1, 1], [], []>} : vector<32x128xbf16>, vector<128x128xbf16>, vector<32x128xf32> -> vector<32x128xf32>
    %c0_14 = arith.constant 0 : index
    %c0_15 = arith.constant 0 : index
    %19 = vector.load %arg7[%c0_14, %c0_15] : memref<1x128xf32, #tpu.memory_space<vmem>>, vector<1x128xf32>
    %20 = vector.broadcast %19 : vector<1x128xf32> to vector<32x128xf32>
    %21 = arith.addf %18, %20 : vector<32x128xf32>
    %cst_16 = arith.constant 0.000000e+00 : f32
    %22 = vector.broadcast %cst_16 : f32 to vector<32x128xf32>
    %23 = arith.maximumf %21, %22 : vector<32x128xf32>
    %24 = arith.truncf %23 : vector<32x128xf32> to vector<32x128xbf16>
    %c0_17 = arith.constant 0 : index
    %c0_18 = arith.constant 0 : index
    %25 = vector.load %arg8[%c0_17, %c0_18] : memref<128x128xbf16, #tpu.memory_space<vmem>>, vector<128x128xbf16>
    %cst_19 = arith.constant dense<0.000000e+00> : vector<32x128xf32>
    %26 = tpu.matmul %24, %25, %cst_19 {dimension_numbers = #tpu.dot_dimension_numbers<[1], [0], [0], [1], [0, 0, 1, 1], [], []>} : vector<32x128xbf16>, vector<128x128xbf16>, vector<32x128xf32> -> vector<32x128xf32>
    %c0_20 = arith.constant 0 : index
    %c0_21 = arith.constant 0 : index
    %27 = vector.load %arg9[%c0_20, %c0_21] : memref<1x128xf32, #tpu.memory_space<vmem>>, vector<1x128xf32>
    %28 = vector.broadcast %27 : vector<1x128xf32> to vector<32x128xf32>
    %29 = arith.addf %26, %28 : vector<32x128xf32>
    %30 = arith.addf %15, %29 : vector<32x128xf32>
    %c0_22 = arith.constant 0 : index
    %c0_23 = arith.constant 0 : index
    %31 = vector.load %arg10[%c0_22, %c0_23] : memref<32x128xf32, #tpu.memory_space<vmem>>, vector<32x128xf32>
    tpu.vector_store %arg10[%c0_22, %c0_23], %30 {strides = array<i32>} : memref<32x128xf32, #tpu.memory_space<vmem>>, vector<32x128xf32>,
    return
  }
  func.func @transform_0(%arg0: i32) -> (i32, i32) {
    %c0_i32 = arith.constant 0 : i32
    %c0_i32_0 = arith.constant 0 : i32
    return %arg0, %c0_i32 : i32, i32
  }
  func.func @transform_1(%arg0: i32) -> (i32, i32) {
    %c0_i32 = arith.constant 0 : i32
    %c0_i32_0 = arith.constant 0 : i32
    %c0_i32_1 = arith.constant 0 : i32
    return %c0_i32, %c0_i32_0 : i32, i32
  }
  func.func @transform_2(%arg0: i32) -> (i32, i32) {
    %c0_i32 = arith.constant 0 : i32
    %c0_i32_0 = arith.constant 0 : i32
    %c0_i32_1 = arith.constant 0 : i32
    return %c0_i32, %c0_i32_0 : i32, i32
  }
  func.func @transform_3(%arg0: i32) -> (i32, i32) {
    %c0_i32 = arith.constant 0 : i32
    %c0_i32_0 = arith.constant 0 : i32
    %c0_i32_1 = arith.constant 0 : i32
    return %c0_i32, %c0_i32_0 : i32, i32
  }
  func.func @transform_4(%arg0: i32) -> (i32, i32) {
    %c0_i32 = arith.constant 0 : i32
    %c0_i32_0 = arith.constant 0 : i32
    %c0_i32_1 = arith.constant 0 : i32
    return %c0_i32, %c0_i32_0 : i32, i32
  }
  func.func @transform_5(%arg0: i32) -> (i32, i32) {
    %c0_i32 = arith.constant 0 : i32
    %c0_i32_0 = arith.constant 0 : i32
    %c0_i32_1 = arith.constant 0 : i32
    return %c0_i32, %c0_i32_0 : i32, i32
  }
  func.func @transform_6(%arg0: i32) -> (i32, i32) {
    %c0_i32 = arith.constant 0 : i32
    %c0_i32_0 = arith.constant 0 : i32
    %c0_i32_1 = arith.constant 0 : i32
    return %c0_i32, %c0_i32_0 : i32, i32
  }
  func.func @transform_7(%arg0: i32) -> (i32, i32) {
    %c0_i32 = arith.constant 0 : i32
    %c0_i32_0 = arith.constant 0 : i32
    %c0_i32_1 = arith.constant 0 : i32
    return %c0_i32, %c0_i32_0 : i32, i32
  }
  func.func @transform_8(%arg0: i32) -> (i32, i32) {
    %c0_i32 = arith.constant 0 : i32
    %c0_i32_0 = arith.constant 0 : i32
    %c0_i32_1 = arith.constant 0 : i32
    return %c0_i32, %c0_i32_0 : i32, i32
  }
  func.func @transform_9(%arg0: i32) -> (i32, i32) {
    %c0_i32 = arith.constant 0 : i32
    %c0_i32_0 = arith.constant 0 : i32
    return %arg0, %c0_i32 : i32, i32
  }
}

</mosaic_0001>

<bundles_post_ra>
// kernel: tpu_custom_call.1
= control target key start
LH: loop header
LB: loop body
LE: loop exit
PB: predicated region body
PF: predicated region fallthrough
CT: control target
= control target key end

     0   :  { %14 = vsyncpa [#allocation3], 0  ;;  %s1587_s0 = inlined_call_operand.vmem [shape: f32[64,24], index: 0, kind: input, shape index: {}]   ;;  %s1588_s1 = inlined_call_operand.vmem [shape: bf16[24,128], index: 1, kind: input, shape index: {}]   ;;  %s1589_s2 = inlined_call_operand.vmem [shape: f32[1,128], index: 2, kind: input, shape index: {}]   ;;  %s1590_s3 = inlined_call_operand.vmem [shape: bf16[128,128], index: 3, kind: input, shape index: {}]   ;;  %s1591_s4 = inlined_call_operand.vmem [shape: f32[1,128], index: 4, kind: input, shape index: {}]   ;;  %s1592_s5 = inlined_call_operand.hbm [shape: bf16[128,128], index: 5, kind: input, shape index: {}]   ;;  %s1593_s6 = inlined_call_operand.vmem [shape: f32[1,128], index: 6, kind: input, shape index: {}]   ;;  %s1594_s7 = inlined_call_operand.hbm [shape: bf16[128,128], index: 7, kind: input, shape index: {}]   ;;  %s1595_s8 = inlined_call_operand.vmem [shape: f32[1,128], index: 8, kind: input, shape index: {}]   ;;  %s1596_s9 = inlined_call_operand.hbm [shape: f32[64,128], index: 9, kind: output, shape index: {}]  }
   0x1   :  { %15 = vsyncpa [#allocation6], 0 }
   0x2   :  { %16 = vsyncpa [#allocation4], 0 }
   0x3   :  { %18 = vsyncpa [#allocation4 + $0x1], 0  ;;  %s1369_s30 = smov 0   ;;  %s1371_s10 = smov 0  }
   0x4   :  { %s1373_s11 = smov 0   ;;  %s1375_s12 = smov 0  }
   0x5 LB: > { %1603 = sst [smem:[#allocation11_spill]] %s1306_s11  ;;  %s1390_s13 = sadd.s32 4294967295, %s1310_s12   ;;  %s1310_s12 = sphi %s1375_s12, %s1617_s12   ;;  %s1306_s11 = sphi %s1373_s11, %s1619_s11   ;;  %s1302_s10 = sphi %s1371_s10, %s1621_s10   ;;  %s1298_s30 = sphi %s1369_s30, %s1620_s30  }
   0x6   : > { %s934_s14 = sadd.s32 4294967294, %s1310_s12   ;;  %s1394_s15 = sadd.s32 1, %s1310_s12  }
   0x7   : > { %1604 = sst [smem:[#allocation12_spill]] %s1394_s15  ;;  %s225_s16 = sadd.s32 1, %s1306_s11 }
   0x8   : > { %s222_s17 = ssub.s32 %s1310_s12, %s1394_s15  ;;  %p235_p0 = scmp.ne.s32.totalorder %s1306_s11, %s1302_s10 }
   0x9   : > { %p223_p1 = scmp.eq.s32.totalorder %s222_s17, 0  ;;  %p236_p2 = scmp.eq.s32.totalorder %s1390_s13, 1 }
   0xa   : > { %p241_p3 = scmp.ne.s32.totalorder %s1302_s10, %s1298_s30  ;;  %p242_p4 = scmp.eq.s32.totalorder %s934_s14, 1 }
   0xb   : > { %s1405_s18 = scalar_select %p223_p1, %s1306_s11, %s225_s16  }
   0xc   : > { %p1407_p5 = por %p236_p2, %p235_p0  ;;  %p1411_p6 = por %p242_p4, %p241_p3 }
   0xd   : > { %1605 = sst [smem:[#allocation13_spill]] %s1405_s18  ;;  %p935_p7 = scmp.ge.s32.totalorder %s1310_s12, 1 }
   0xe   : > { %s1606_s19 = scalar_select %p1407_p5, 1, 0 }
   0xf   : > { %s1607_s20 = scalar_select %p1411_p6, 1, 0 }
  0x10   : > { %p249_p8 = scmp.lt.s32.totalorder %s1310_s12, 3  ;;  %p1597_p9 = scmp.eq.s32.totalorder %s1390_s13, 0 }
  0x11   : > { %s1312_s22 = smov [#allocation2]   ;;  %s1313_s25 = smov [#allocation5]  }
  0x12   : > { %p1418_p10 = pnand %p935_p7, %p249_p8  ;;  %s273_s23 = sshll.u32 %s1312_s22, 4  ;;  %s274_s23 = int_to_ptr.vmem [resolvable:$true] %s273_s23 }
  0x13   : > { %s289_s26 = sshll.u32 %s1313_s25, 4  ;;  %s1184_s29 = scalar_lea.hbm %s1592_s5, 1024  ;;  %s1430_s26 = int_to_ptr.vmem [resolvable:$true] %s289_s26 }
  0x14   : > { %s1608_s21 = scalar_select %p1418_p10, 1, 0 }
  0x15   : > { %p1096_p11 = pneg %p1418_p10  ;;  %p1185_p13 = scmp.ne.s32.totalorder %s1592_s5, %s1184_s29 }
  0x16   : > { %p1191_p3 = scmp.lt.u32.totalorder %s1184_s29, %s1592_s5 }
  0x17   : > { %p1426_p12 = pnand %p1597_p9, %p1096_p11 }
  0x19   : > { %p1186_p0 = pneg %p1426_p12 }
  0x1b   : > { %p1187_p1 = pnand %p1186_p0, %p1185_p13 }
  0x1d   : > { %p1188_p2 = pneg %p1187_p1 }
  0x1f   : > { %p1193_p4 = pnand %p1191_p3, %p1188_p2 }
  0x21   : > { %1196 = shalt.err (!%p1193_p4)
}
  0x22   : > { %s1197_s25 = scalar_lea.vmem %s274_s23, 1024  ;;  %p1205_p9 = scmp.lt.s32.totalorder %s274_s23, %s274_s23 }
  0x23   : > { %p1198_p7 = scmp.ne.s32.totalorder %s274_s23, %s1197_s25  ;;  %p1206_p6 = scmp.lt.s32.totalorder %s1197_s25, %s1197_s25 }
  0x25   : > { %p1200_p8 = pnand %p1198_p7, %p1186_p0  ;;  %p1207_p5 = por %p1206_p6, %p1205_p9 }
  0x27   : > { %p1201_p11 = pneg %p1200_p8 }
  0x29   : > { %p1208_p10 = pnand %p1207_p5, %p1201_p11 }
  0x2b   : > { %1211 = shalt.err (!%p1208_p10)
}
  0x2c   : > { %s1314_s27 = smov 64   ;;  %s1315_s28 = smov 4  }
  0x2d   : > { %1099 = dma.hbm_to_vmem [thread:$0]  (!%p1426_p12), %s1592_s5, 1024, %s274_s23, [#allocation3], %s1314_s27, %s1314_s27, %s1315_s28  }
  0x2e   : > { %s1212_s22 = scalar_lea.hbm %s1594_s7, 1024 }
  0x2f   : > { %p1213_p13 = scmp.ne.s32.totalorder %s1594_s7, %s1212_s22  ;;  %p1219_p9 = scmp.lt.u32.totalorder %s1212_s22, %s1594_s7 }
  0x31   : > { %p1215_p5 = pnand %p1213_p13, %p1186_p0 }
  0x33   : > { %p1216_p6 = pneg %p1215_p5 }
  0x35   : > { %p1221_p10 = pnand %p1219_p9, %p1216_p6 }
  0x37   : > { %1224 = shalt.err (!%p1221_p10)
}
  0x38   : > { %s1225_s23 = scalar_lea.vmem %s1430_s26, 1024  ;;  %p1233_p4 = scmp.lt.s32.totalorder %s1430_s26, %s1430_s26 }
  0x39   : > { %p1226_p1 = scmp.ne.s32.totalorder %s1430_s26, %s1225_s23  ;;  %p1234_p7 = scmp.lt.s32.totalorder %s1225_s23, %s1225_s23 }
  0x3b   : > { %p1228_p2 = pnand %p1226_p1, %p1186_p0  ;;  %p1235_p8 = por %p1234_p7, %p1233_p4 }
  0x3d   : > { %p1229_p3 = pneg %p1228_p2 }
  0x3f   : > { %p1236_p11 = pnand %p1235_p8, %p1229_p3 }
  0x41   : > { %1239 = shalt.err (!%p1236_p11)
}
  0x42   : > { %1102 = dma.hbm_to_vmem [thread:$0]  (!%p1426_p12), %s1594_s7, 1024, %s1430_s26, [#allocation6], %s1314_s27, %s1314_s27, %s1315_s28  }
  0x43   : > { %p1610_p13 = scmp.ne.s32.totalorder %s1608_s21, 0 }
  0x44   : > { %p1611_p5 = scmp.eq.s32.totalorder (!%p1610_p13), %s1390_s13, 0 }
  0x45   : > { %317 = sbr.rel (%p1610_p13) target bundleno = 1000 (0x3e8), region = 56 }
  0x4c   : > { %1285 = dma.done.wait (%p1611_p5), [#allocation3], 1024   ;;  %p1612_p0 = pmov %p1611_p5 }
  0x4e   : > { %1287 = vsyncadd (%p1612_p0), [#allocation3], 4294966272  ;;  %p1613_p6 = pmov %p1612_p0 }
  0x4f   : > { %p1614_p9 = pmov %p1612_p0 }
  0x50   : > { %1289 = dma.done.wait (%p1613_p6), [#allocation6], 1024  }
  0x51   : > { %1291 = vsyncadd (%p1614_p9), [#allocation6], 4294966272  ;;  %s943_s18 = sshll.u32 %s1390_s13, 2  ;;  %v1150_v0 = vld [vmem:[%s1588_s1] sm:$0xff]   ;;  %v1151_v1 = vld [vmem:[%s1588_s1 + $0x8] ss:$0 sps:$4 sm:$0xff]  }
  0x52   : > { %p358_p10 = scmp.lt.s32.totalorder %s943_s18, 7  ;;  %vm397_vm0 = vcmask 1043456   ;;  %1017 = vmatprep.subr.bf16.mxu0 %v1150_v0  ;;  %vm390_vm1 = vcmask 195584   ;;  %v1152_v7 = vld [vmem:[%s1590_s3] sm:$0xff]   ;;  %v1153_v9 = vld [vmem:[%s1590_s3 + $0x8] sm:$0xff]   ;;  %v1154_v11 = vld [vmem:[%s1590_s3 + $0x10] sm:$0xff]  }
  0x53   : > { %1018 = vmatpush3.bf16.msra.mxu0 %v1150_v0  ;;  %v399_v8 = vsel %vm397_vm0, %v1151_v1, 0  ;;  %1025 = vmatprep.subr.bf16.mxu1 %v1152_v7  ;;  %v1155_v12 = vld [vmem:[%s1590_s3 + $0x18] sm:$0xff]   ;;  %v1156_v13 = vld [vmem:[%s1590_s3 + $0x20] sm:$0xff]   ;;  %v1157_v14 = vld [vmem:[%s1590_s3 + $0x28] sm:$0xff]   ;;  %s982_s14 = sshll.u32 %s1390_s13, 9  ;;  %p1615_p1 = scmp.ne.s32.totalorder %s1606_s19, 0 }
  0x54   : > { %s1623_s18 = smov (!%p358_p10, %s943_s18), 7  ;;  %1085 = vmatprep.subr.msk.bf16.mxu0 %vm397_vm0, %v1151_v1  ;;  %1026 = vmatpush3.bf16.msra.mxu1 %v1152_v7  ;;  %v1158_v15 = vld [vmem:[%s1590_s3 + $0x30] sm:$0xff]   ;;  %v1159_v16 = vld [vmem:[%s1590_s3 + $0x38] sm:$0xff]   ;;  %v1160_v17 = vld [vmem:[#allocation2] sm:$0xff]   ;;  %s1544_s22 = scalar_lea.hbm %s1596_s9, %s982_s14 }
  0x55   : > { %s944_s24 = sshll.u32 %s1623_s18, 3  ;;  %1027 = vmatprep.subr.bf16.mxu1 %v1153_v9  ;;  %v1161_v18 = vld [vmem:[#allocation2 + $0x8] sm:$0xff]   ;;  %v1162_v19 = vld [vmem:[#allocation2 + $0x10] sm:$0xff]   ;;  %v945_v20 = vld [vmem:[%s1589_s2] ss:$0 sm:$0xff]  ;;  %s1316_s23 = smov [#allocation7]  }
  0x56   : > { %s361_s27 = scalar_lea.vmem %s1587_s0, %s944_s24  ;;  %v1163_v35 = vld [vmem:[#allocation2 + $0x18] sm:$0xff]   ;;  %v1164_v36 = vld [vmem:[#allocation2 + $0x20] sm:$0xff]   ;;  %v1165_v37 = vld [vmem:[#allocation2 + $0x28] sm:$0xff]   ;;  %s354_s24 = sand.u32 1, %s1302_s10  }
  0x57   : > { %v365_v2 = vld [vmem:[%s361_s27] sm:$0xff]  ;;  %v366_v3 = vld [vmem:[%s361_s27 + $0x8] sm:$0xff]  ;;  %v367_v4 = vld [vmem:[%s361_s27 + $0x10] sm:$0xff]  ;;  %1020 = vmatpush3.bf16.msra.mxu0 %v399_v8  ;;  %s942_s26 = sshll.u32 %s354_s24, 5  ;;  %s1546_s13 = scalar_lea.sflag [#allocation4], %s354_s24 }
  0x58   : > { %v368_v5 = vld [vmem:[%s361_s27 + $0x18] sm:$0xff]  ;;  %v369_v6 = vpack.c.bf16 %v366_v3, %v365_v2  ;;  %1028 = vmatpush3.bf16.msra.mxu1 %v1153_v9  ;;  %1045 = vmatprep.subr.bf16.mxu0 %v1160_v17  ;;  %v1166_v38 = vld [vmem:[#allocation2 + $0x30] sm:$0xff]   ;;  %v1168_v40 = vld [vmem:[#allocation5] sm:$0xff]   ;;  %s356_s28 = scalar_lea.vmem [#allocation7], %s942_s26  ;;  %s1244_s11 = sshll.u32 %s1316_s23, 4  ;;  %s1245_s11 = int_to_ptr.vmem [resolvable:$false] %s1244_s11 }
  0x59   : > { %v370_v10 = vpack.c.bf16 %v368_v5, %v367_v4  ;;  %1029 = vmatprep.subr.bf16.mxu1 %v1154_v11  ;;  %v1167_v39 = vld [vmem:[#allocation2 + $0x38] sm:$0xff]   ;;  %v1169_v41 = vld [vmem:[#allocation5 + $0x8] sm:$0xff]   ;;  %v1170_v42 = vld [vmem:[#allocation5 + $0x10] sm:$0xff]   ;;  %s850_s29 = sshll.u32 %s356_s28, 4  ;;  %s1246_s15 = scalar_lea.vmem %s1245_s11, 1024  ;;  %s1539_s29 = int_to_ptr.vmem [resolvable:$true] %s850_s29 }
  0x5a   : > { %1021 = vmatprep.mubr.msk.bf16.mxu0 %vm390_vm1, %v369_v6  ;;  %v1171_v43 = vld [vmem:[#allocation5 + $0x18] sm:$0xff]   ;;  %v1172_v44 = vld [vmem:[#allocation5 + $0x20] sm:$0xff]   ;;  %v1173_v45 = vld [vmem:[#allocation5 + $0x28] sm:$0xff]   ;;  %s1240_s25 = scalar_lea.vmem %s1539_s29, 512  ;;  %p1247_p4 = scmp.lt.s32.totalorder %s1539_s29, %s1245_s11 }
  0x5b   : > { %1022 = vmatmul.mubr.msk.bf16.vlgmr.msra.gmra.mrb[0].mxu0 %vm390_vm1, %v370_v10  ;;  %v950_v46 = vld [vmem:[%s1591_s4] ss:$0 sm:$0xff]  ;;  %v1174_v61 = vld [vmem:[#allocation5 + $0x30] sm:$0xff]   ;;  %v1175_v62 = vld [vmem:[#allocation5 + $0x38] sm:$0xff]   ;;  %p1241_p12 = scmp.ne.s32.totalorder %s1539_s29, %s1240_s25  ;;  %p1248_p7 = scmp.lt.s32.totalorder %s1246_s15, %s1240_s25 }
  0x5c   : > { %1030 = vmatpush3.bf16.msra.mxu1 %v1154_v11  ;;  %1046 = vmatpush3.bf16.msra.mxu0 %v1160_v17  ;;  %v959_v63 = vld [vmem:[%s1593_s6] ss:$0 sm:$0xff] }
  0x5d   : > { %1031 = vmatprep.subr.bf16.mxu1 %v1155_v12  ;;  %1047 = vmatprep.subr.bf16.mxu0 %v1161_v18  ;;  %p1242_p2 = pnand %p1241_p12, %p1615_p1  ;;  %p1249_p8 = por %p1248_p7, %p1247_p4 }
  0x5f   : > { %p1243_p3 = pneg %p1242_p2 }
  0x60   : > { %1032 = vmatpush3.bf16.msra.mxu1 %v1155_v12  ;;  %1048 = vmatpush3.bf16.msra.mxu0 %v1161_v18 }
  0x61   : > { %1033 = vmatprep.subr.bf16.mxu1 %v1156_v13  ;;  %1049 = vmatprep.subr.bf16.mxu0 %v1162_v19  ;;  %p1250_p11 = pnand %p1249_p8, %p1243_p3 }
  0x64   : > { %1034 = vmatpush3.bf16.msra.mxu1 %v1156_v13  ;;  %1050 = vmatpush3.bf16.msra.mxu0 %v1162_v19 }
  0x65   : > { %1035 = vmatprep.subr.bf16.mxu1 %v1157_v14  ;;  %1051 = vmatprep.subr.bf16.mxu0 %v1163_v35 }
  0x68   : > { %1036 = vmatpush3.bf16.msra.mxu1 %v1157_v14  ;;  %1052 = vmatpush3.bf16.msra.mxu0 %v1163_v35  ;;  %v968_v14 = vld [vmem:[%s1595_s8] ss:$0 sm:$0xff] }
  0x69   : > { %1037 = vmatprep.subr.bf16.mxu1 %v1158_v15  ;;  %1053 = vmatprep.subr.bf16.mxu0 %v1164_v36 }
  0x6c   : > { %1038 = vmatpush3.bf16.msra.mxu1 %v1158_v15  ;;  %1054 = vmatpush3.bf16.msra.mxu0 %v1164_v36 }
  0x6d   : > { %1039 = vmatprep.subr.bf16.mxu1 %v1159_v16  ;;  %1055 = vmatprep.subr.bf16.mxu0 %v1165_v37 }
  0x70   : > { %1040 = vmatpush3.bf16.msra.mxu1 %v1159_v16  ;;  %1056 = vmatpush3.bf16.msra.mxu0 %v1165_v37 }
  0x71   : > { %1057 = vmatprep.subr.bf16.mxu0 %v1166_v38  ;;  %1065 = vmatprep.subr.bf16.mxu1 %v1168_v40 }
  0x74   : > { %1058 = vmatpush3.bf16.msra.mxu0 %v1166_v38 }
  0x75   : > { %1059 = vmatprep.subr.bf16.mxu0 %v1167_v39 }
  0x78   : > { %1060 = vmatpush3.bf16.msra.mxu0 %v1167_v39 }
 0x12e   : > { %v1023_v21 = vpop.f32.mrb[0].mxu0 }
 0x12f   : > { %v444_v22 = vadd.f32 %v1023_v21, %v945_v20  ;;  %v435_v23 = vpop.f32.mrb[1].mxu0 }
 0x130   : > { %v436_v24 = vadd.f32 %v945_v20, %v435_v23  ;;  %v1024_v25 = vpop.f32.mrb[2].mxu0 }
 0x131   : > { %v447_v26 = vadd.f32 %v1024_v25, %v945_v20  ;;  %v438_v27 = vpop.f32.mrb[3].mxu0  ;;  %v452_v29 = vmax.f32 %v444_v22, 0.0 }
 0x132   : > { %v439_v28 = vadd.f32 %v945_v20, %v438_v27  ;;  %v450_v31 = vmax.f32 %v436_v24, 0.0 }
 0x133   : > { %v453_v30 = vmax.f32 %v447_v26, 0.0 }
 0x134   : > { %v451_v32 = vmax.f32 %v439_v28, 0.0 }
 0x135   : > { %v455_v33 = vpack.c.bf16 %v453_v30, %v452_v29 }
 0x136   : > { %v454_v34 = vpack.c.bf16 %v451_v32, %v450_v31 }
 0x138   : > { %1041 = vmatprep.mubr.bf16.mxu1 %v454_v34 }
 0x139   : > { %1042 = vmatmul.mubr.bf16.vlgmr.msra.gmra.mrb[0].mxu1 %v455_v33 }
 0x13a   : > { %1066 = vmatpush3.bf16.msra.mxu1 %v1168_v40 }
 0x13b   : > { %1067 = vmatprep.subr.bf16.mxu1 %v1169_v41 }
 0x13e   : > { %1068 = vmatpush3.bf16.msra.mxu1 %v1169_v41 }
 0x13f   : > { %1069 = vmatprep.subr.bf16.mxu1 %v1170_v42 }
 0x142   : > { %1070 = vmatpush3.bf16.msra.mxu1 %v1170_v42 }
 0x143   : > { %1071 = vmatprep.subr.bf16.mxu1 %v1171_v43 }
 0x146   : > { %1072 = vmatpush3.bf16.msra.mxu1 %v1171_v43 }
 0x147   : > { %1073 = vmatprep.subr.bf16.mxu1 %v1172_v44 }
 0x14a   : > { %1074 = vmatpush3.bf16.msra.mxu1 %v1172_v44 }
 0x14b   : > { %1075 = vmatprep.subr.bf16.mxu1 %v1173_v45 }
 0x14e   : > { %1076 = vmatpush3.bf16.msra.mxu1 %v1173_v45 }
 0x14f   : > { %1077 = vmatprep.subr.bf16.mxu1 %v1174_v61 }
 0x152   : > { %1078 = vmatpush3.bf16.msra.mxu1 %v1174_v61 }
 0x153   : > { %1079 = vmatprep.subr.bf16.mxu1 %v1175_v62 }
 0x156   : > { %1080 = vmatpush3.bf16.msra.mxu1 %v1175_v62 }
 0x20c   : > { %v1043_v47 = vpop.f32.mrb[0].mxu1 }
 0x20d   : > { %v561_v48 = vpop.f32.mrb[1].mxu1  ;;  %v570_v51 = vadd.f32 %v1043_v47, %v950_v46 }
 0x20e   : > { %v562_v49 = vadd.f32 %v950_v46, %v561_v48  ;;  %v1044_v50 = vpop.f32.mrb[2].mxu1 }
 0x20f   : > { %v573_v52 = vadd.f32 %v1044_v50, %v950_v46  ;;  %v564_v53 = vpop.f32.mrb[3].mxu1 }
 0x210   : > { %1176 = vtanh.f32 %v562_v49  ;;  %v565_v54 = vadd.f32 %v950_v46, %v564_v53 }
 0x211   : > { %1178 = vtanh.f32 %v573_v52 }
 0x212   : > { %1180 = vtanh.f32 %v565_v54 }
 0x213   : > { %1182 = vtanh.f32 %v570_v51 }
 0x21a   : > { %v1177_v55 = vpop.eup %1176 }
 0x21b   : > { %v1179_v56 = vpop.eup %1178 }
 0x21c   : > { %v1181_v57 = vpop.eup %1180 }
 0x21d   : > { %v1183_v58 = vpop.eup %1182  ;;  %v580_v59 = vpack.c.bf16 %v1181_v57, %v1177_v55 }
 0x21e   : > { %v581_v60 = vpack.c.bf16 %v1179_v56, %v1183_v58 }
 0x21f   : > { %1061 = vmatprep.mubr.bf16.mxu0 %v580_v59 }
 0x220   : > { %1062 = vmatmul.mubr.bf16.vlgmr.msra.gmra.mrb[4].mxu0 %v581_v60 }
 0x2f3   : > { %v1063_v0 = vpop.f32.mrb[4].mxu0 }
 0x2f4   : > { %v696_v1 = vadd.f32 %v1063_v0, %v959_v63  ;;  %v687_v2 = vpop.f32.mrb[5].mxu0 }
 0x2f5   : > { %v688_v3 = vadd.f32 %v959_v63, %v687_v2  ;;  %v1064_v4 = vpop.f32.mrb[6].mxu0 }
 0x2f6   : > { %v699_v5 = vadd.f32 %v1064_v4, %v959_v63  ;;  %v690_v6 = vpop.f32.mrb[7].mxu0  ;;  %v704_v8 = vmax.f32 %v696_v1, 0.0 }
 0x2f7   : > { %v691_v7 = vadd.f32 %v959_v63, %v690_v6  ;;  %v702_v10 = vmax.f32 %v688_v3, 0.0 }
 0x2f8   : > { %v705_v9 = vmax.f32 %v699_v5, 0.0 }
 0x2f9   : > { %v703_v11 = vmax.f32 %v691_v7, 0.0 }
 0x2fa   : > { %v707_v12 = vpack.c.bf16 %v705_v9, %v704_v8 }
 0x2fb   : > { %v706_v13 = vpack.c.bf16 %v703_v11, %v702_v10 }
 0x2fd   : > { %1081 = vmatprep.mubr.bf16.mxu1 %v706_v13 }
 0x2fe   : > { %1082 = vmatmul.mubr.bf16.vlgmr.msra.gmra.mrb[4].mxu1 %v707_v12 }
 0x3d1   : > { %v1083_v15 = vpop.f32.mrb[4].mxu1 }
 0x3d2   : > { %v822_v16 = vadd.f32 %v1083_v15, %v968_v14  ;;  %v813_v17 = vpop.f32.mrb[5].mxu1 }
 0x3d3   : > { %v814_v18 = vadd.f32 %v968_v14, %v813_v17  ;;  %v1084_v19 = vpop.f32.mrb[6].mxu1 }
 0x3d4   : > { %v830_v20 = vadd.f32 %v1183_v58, %v822_v16  ;;  %v825_v21 = vadd.f32 %v1084_v19, %v968_v14  ;;  %v816_v22 = vpop.f32.mrb[7].mxu1 }
 0x3d5   : > { %v828_v23 = vadd.f32 %v1177_v55, %v814_v18  ;;  %v817_v24 = vadd.f32 %v968_v14, %v816_v22 }
 0x3d6   : > { %834 = vst [vmem:[%s356_s28 + $0x10] sm:$0xff] %v830_v20  ;;  %v831_v25 = vadd.f32 %v1179_v56, %v825_v21 }
 0x3d7   : > { %832 = vst [vmem:[%s356_s28] sm:$0xff] %v828_v23  ;;  %v829_v26 = vadd.f32 %v1181_v57, %v817_v24 }
 0x3d8   : > { %835 = vst [vmem:[%s356_s28 + $0x18] sm:$0xff] %v831_v25 }
 0x3d9   : > { %833 = vst [vmem:[%s356_s28 + $0x8] sm:$0xff] %v829_v26 }
 0x3da   : > { %1253 = shalt.err (!%p1250_p11)
}
 0x3db   : > { %s1254_s18 = scalar_lea.hbm %s1544_s22, 512  ;;  %s1258_s21 = scalar_lea.hbm %s1596_s9, 1024 }
 0x3dc   : > { %p1255_p13 = scmp.ne.s32.totalorder %s1544_s22, %s1254_s18  ;;  %p1259_p6 = scmp.lt.u32.totalorder %s1544_s22, %s1596_s9 }
 0x3dd   : > { %p1260_p9 = scmp.lt.u32.totalorder %s1258_s21, %s1254_s18  ;;  %p1262_p12 = scmp.lt.u32.totalorder %s1254_s18, %s1544_s22 }
 0x3de   : > { %p1256_p5 = pnand %p1255_p13, %p1615_p1 }
 0x3df   : > { %p1261_p10 = por %p1260_p9, %p1259_p6 }
 0x3e0   : > { %p1257_p0 = pneg %p1256_p5 }
 0x3e1   : > { %p1263_p2 = por %p1262_p12, %p1261_p10 }
 0x3e3   : > { %p1264_p3 = pnand %p1263_p2, %p1257_p0 }
 0x3e5   : > { %1267 = shalt.err (!%p1264_p3)
}
 0x3e6   : > { %s1317_s14 = smov 128   ;;  %s1318_s16 = smov 8  }
 0x3e7   : > { %1094 = dma.vmem_to_hbm [thread:$0]  (%p1615_p1), %s1539_s29, 512, %s1544_s22, %s1546_s13, %s1317_s14, %s1317_s14, %s1318_s16  }
 0x3e8 PF: > { %p1111_p4 = scmp.ge.s32.totalorder %s1310_s12, 2  ;;  %s865_s17 = sand.u32 1, %s1298_s30  }
 0x3e9   : > { %p1616_p7 = scmp.ne.s32.totalorder %s1607_s20, 0  ;;  %s866_s25 = scalar_lea.sflag [#allocation4], %s865_s17 }
 0x3eb   : > { %p1104_p8 = pnand %p1111_p4, %p1616_p7 }
 0x3ed   : > { %1293 = dma.done.wait (!%p1104_p8), %s866_s25, 512  }
 0x3ee   : > { %1295 = vsyncadd (!%p1104_p8), %s866_s25, 4294966784  ;;  %s1617_s12 = sld [smem:[#allocation12_spill]]  ;;  %s1618_s23 = sld [smem:[#allocation11_spill]] }
 0x3ef   : > { %s1619_s11 = sld [smem:[#allocation13_spill]]  ;;  %s1620_s30 = smov %s1302_s10 }
 0x3f4   : > { %p21_p11 = scmp.ge.s32.totalorder %s1617_s12, 4   ;;  %s1621_s10 = smov %s1618_s23 }
 0x3f6   :  { %23 = sbr.rel (!%p21_p11) target bundleno = 5 (0x5), region = 100 }
 0x3fd   :  { %871 = vsyncpa [#allocation3], 1 }
 0x3fe   :  { %873 = vsyncpa [#allocation3 + $0x1], 1 }
 0x3ff   :  { %874 = vsyncpa [#allocation6], 1 }
 0x400   :  { %875 = vsyncpa [#allocation4], 1 }
 0x401   :  { %877 = vsyncpa [#allocation4 + $0x1], 1 }

</bundles_post_ra>
